<compile_context>
chip_gen: v7x
topology: tpu7x:2x2x1
jax: 0.10.0
libtpu: 0.0.40
codegen_flags: <defaults>
</compile_context>

<pallas_src>
import jax
import jax.numpy as jnp
import numpy as np
from jax.experimental import pallas as pl
from jax.experimental.pallas import tpu as pltpu


def _min_fold_kernel(ge_ref, p_ref, out_ref):
    """Grid = (batch_tiles, N).  out_ref holds the running survival S(v)."""
    n = pl.program_id(1)

    # Survival of the n-th distribution: q[b, v] = P_n(X >= s_v) = p_n @ ge.
    q = jnp.dot(p_ref[...], ge_ref[...], preferred_element_type=jnp.float32)

    @pl.when(n == 0)
    def _():
        out_ref[...] = q

    @pl.when(n > 0)
    def _():
        out_ref[...] = out_ref[...] * q

    # Finalize on the last distribution: pmf[v] = S[v] - S[v+1], with S[Mp] := 0.
    @pl.when(n == pl.num_programs(1) - 1)
    def _():
        s = out_ref[...]                                    # (tb, Mp)
        tb = s.shape[0]
        s_next = jnp.concatenate(
            [s[:, 1:], jnp.zeros((tb, 1), jnp.float32)], axis=-1)
        out_ref[...] = s - s_next


def _round_up(x, m):
    return ((x + m - 1) // m) * m


def min_forward(symbols, *probs):
    """Min(*distrs): distribution of min over N independent distributions.

    `symbols` must be sorted strictly ascending (distinct values); the kernel
    relies on index order only, so `symbols` is never read on-device.
    Accepts either N arrays of shape (B, M) or a single pre-stacked (N, B, M)
    array (callers can use the latter to avoid the stack/pad HBM round-trip).
    """
    assert len(probs) >= 1

    if len(probs) == 1 and probs[0].ndim == 3:
        P_in = jnp.asarray(probs[0], jnp.float32)
        N, B, M = P_in.shape
    else:
        N = len(probs)
        B, M = probs[0].shape
        P_in = None

    # Host-side invariant check (skipped silently for traced/abstract symbols).
    try:
        s_np = np.asarray(jax.device_get(symbols)).reshape(-1)
    except Exception:
        s_np = None
    if s_np is not None and not bool(np.all(np.diff(s_np) > 0)):
        raise ValueError("Min: `symbols` must be sorted strictly ascending and distinct")

    if N == 1:
        return P_in[0] if P_in is not None else probs[0]

    # Lane/sublane-dense padding.
    Mp = max(128, _round_up(M, 128))
    B8 = max(8, _round_up(B, 8))

    # Batch tile: big enough to amortize per-step overhead (<=512 rows), and
    # >= 2 tiles whenever possible so the "parallel" axis spans both v7x TCs.
    if B8 >= 16:
        tb = min(512, _round_up((B8 + 1) // 2, 8))
    else:
        tb = B8
    Bp = _round_up(B8, tb)

    P = jnp.stack(probs, axis=0).astype(jnp.float32) if P_in is None else P_in
    P = jnp.pad(P, ((0, 0), (0, Bp - B), (0, Mp - M)))      # zero prob in pad slots

    # ge[j, v] = [s_j >= s_v] == [j >= v]  (symbols sorted ascending, distinct).
    # Built once on host; constant block index keeps it VMEM-resident.
    idx = jnp.arange(Mp, dtype=jnp.int32)
    ge = (idx[:, None] >= idx[None, :]).astype(jnp.float32)  # (Mp, Mp)

    grid = (Bp // tb, N)

    # Explicit scoped-VMEM budget (defaults: 16 MiB v5e / 32 MiB v6e,v7x).
    vmem_bytes = 4 * (2 * Mp * Mp + 2 * tb * Mp + 2 * tb * Mp) + (4 << 20)
    vmem_limit = int(min(max(vmem_bytes, 32 << 20), 64 << 20))

    out = pl.pallas_call(
        _min_fold_kernel,
        out_shape=jax.ShapeDtypeStruct((Bp, Mp), jnp.float32),
        grid=grid,
        in_specs=[pl.BlockSpec((Mp, Mp), lambda bi, n: (0, 0)),      # ge (resident)
                  pl.BlockSpec((None, tb, Mp), lambda bi, n: (n, bi, 0))],
        out_specs=pl.BlockSpec((tb, Mp), lambda bi, n: (bi, 0)),
        compiler_params=pltpu.CompilerParams(
            dimension_semantics=("parallel", "arbitrary"),
            vmem_limit_bytes=vmem_limit),
    )(ge, P)
    return out[:B, :M]


# ---------------- pure-JAX reference (explicit cartesian product) -------------

def _ref_min_pair(symbols, p1, p2):
    s = symbols[0]                                           # (M,)
    joint = p1[:, :, None] * p2[:, None, :]                  # (B, M, M)
    minmat = jnp.minimum(s[:, None], s[None, :])             # (M, M)
    mask = (minmat[:, :, None] == s[None, None, :]).astype(jnp.float32)  # (M,M,V)
    return jnp.einsum('bij,ijv->bv', joint, mask)


def _ref_min_forward(symbols, *probs):
    res = probs[0]
    for p in probs[1:]:
        res = _ref_min_pair(symbols, res, p)
    return res


if __name__ == "__main__":
    key = jax.random.PRNGKey(0)
    B, M, N_DISTR = 2, 16, 3          # batch, num_symbols, number of distributions

    # Shared symbol set: sorted strictly-ascending distinct values 0..M-1.
    symbols = jnp.arange(M, dtype=jnp.float32).reshape(1, M)

    # Deterministic synthetic probability tensors (normalized per batch row).
    keys = jax.random.split(key, N_DISTR)
    probs = []
    for k in keys:
        logits = jax.random.normal(k, (B, M), dtype=jnp.float32)
        probs.append(jax.nn.softmax(logits, axis=-1))

    out = min_forward(symbols, *probs)
    out = jax.block_until_ready(out)

    ref = _ref_min_forward(symbols, *probs)
    assert out.shape == (B, M)
    assert jnp.allclose(out, ref, atol=1e-5, rtol=1e-5), "Pallas output mismatch vs reference"
    # Result is still a valid distribution (rows sum to 1).
    assert jnp.allclose(out.sum(axis=-1), jnp.ones((B,), jnp.float32), atol=1e-5)

    print("KERNEL_OK")
</pallas_src>

<mosaic_0001>
module attributes {stable_mosaic.version = 11 : i64} {
  func.func @_min_fold_kernel(%arg0: i32, %arg1: i32, %arg2: memref<128x128xf32, #tpu.memory_space<vmem>>, %arg3: memref<1x8x128xf32, #tpu.memory_space<vmem>>, %arg4: memref<8x128xf32, #tpu.memory_space<vmem>>) attributes {dimension_semantics = [#tpu.dimension_semantics<parallel>, #tpu.dimension_semantics<arbitrary>], iteration_bounds = array<i64: 1, 3>, scalar_prefetch = 0 : i64, scratch_operands = 0 : i64, tpu.core_type = #tpu.core_type<tc>, window_params = [{pipeline_mode = #tpu.pipeline_mode<synchronous>, transform_indices = @transform_0, window_bounds = array<i64: 128, 128>}, {transform_indices = @transform_1, window_bounds = array<i64: 1, 8, 128>}, {transform_indices = @transform_2, window_bounds = array<i64: 8, 128>}]} {
    %c0 = arith.constant 0 : index
    %c0_0 = arith.constant 0 : index
    %c0_1 = arith.constant 0 : index
    %0 = vector.load %arg3[%c0, %c0_0, %c0_1] : memref<1x8x128xf32, #tpu.memory_space<vmem>>, vector<1x8x128xf32>
    %1 = vector.shape_cast %0 : vector<1x8x128xf32> to vector<8x128xf32>
    %c0_2 = arith.constant 0 : index
    %c0_3 = arith.constant 0 : index
    %2 = vector.load %arg2[%c0_2, %c0_3] : memref<128x128xf32, #tpu.memory_space<vmem>>, vector<128x128xf32>
    %cst = arith.constant dense<0.000000e+00> : vector<8x128xf32>
    %3 = tpu.matmul %1, %2, %cst {dimension_numbers = #tpu.dot_dimension_numbers<[1], [0], [0], [1], [0, 0, 1, 1], [], []>} : vector<8x128xf32>, vector<128x128xf32>, vector<8x128xf32> -> vector<8x128xf32>
    %c0_i32 = arith.constant 0 : i32
    %4 = arith.cmpi eq, %arg1, %c0_i32 : i32
    %5 = arith.extui %4 : i1 to i32
    %c0_i32_4 = arith.constant 0 : i32
    %6 = arith.cmpi ne, %5, %c0_i32_4 : i32
    scf.if %6 {
      %c0_8 = arith.constant 0 : index
      %c0_9 = arith.constant 0 : index
      %13 = vector.load %arg4[%c0_8, %c0_9] : memref<8x128xf32, #tpu.memory_space<vmem>>, vector<8x128xf32>
      tpu.vector_store %arg4[%c0_8, %c0_9], %3 {strides = array<i32>} : memref<8x128xf32, #tpu.memory_space<vmem>>, vector<8x128xf32>,
    } else {
    }
    %c0_i32_5 = arith.constant 0 : i32
    %7 = arith.cmpi sgt, %arg1, %c0_i32_5 : i32
    %8 = arith.extui %7 : i1 to i32
    %c0_i32_6 = arith.constant 0 : i32
    %9 = arith.cmpi ne, %8, %c0_i32_6 : i32
    scf.if %9 {
      %c0_8 = arith.constant 0 : index
      %c0_9 = arith.constant 0 : index
      %13 = vector.load %arg4[%c0_8, %c0_9] : memref<8x128xf32, #tpu.memory_space<vmem>>, vector<8x128xf32>
      %14 = arith.mulf %13, %3 : vector<8x128xf32>
      %c0_10 = arith.constant 0 : index
      %c0_11 = arith.constant 0 : index
      %15 = vector.load %arg4[%c0_10, %c0_11] : memref<8x128xf32, #tpu.memory_space<vmem>>, vector<8x128xf32>
      tpu.vector_store %arg4[%c0_10, %c0_11], %14 {strides = array<i32>} : memref<8x128xf32, #tpu.memory_space<vmem>>, vector<8x128xf32>,
    } else {
    }
    %c2_i32 = arith.constant 2 : i32
    %10 = arith.cmpi eq, %arg1, %c2_i32 : i32
    %11 = arith.extui %10 : i1 to i32
    %c0_i32_7 = arith.constant 0 : i32
    %12 = arith.cmpi ne, %11, %c0_i32_7 : i32
    scf.if %12 {
      %c0_8 = arith.constant 0 : index
      %c0_9 = arith.constant 0 : index
      %13 = vector.load %arg4[%c0_8, %c0_9] : memref<8x128xf32, #tpu.memory_space<vmem>>, vector<8x128xf32>
      %14 = vector.extract_strided_slice %13 {offsets = [0, 1], sizes = [8, 127], strides = [1, 1]} : vector<8x128xf32> to vector<8x127xf32>
      %cst_10 = arith.constant 0.000000e+00 : f32
      %15 = vector.broadcast %cst_10 : f32 to vector<8x1xf32>
      %16 = tpu.concatenate %14, %15 in 1 : vector<8x127xf32>, vector<8x1xf32> -> vector<8x128xf32>
      %17 = arith.subf %13, %16 : vector<8x128xf32>
      %c0_11 = arith.constant 0 : index
      %c0_12 = arith.constant 0 : index
      %18 = vector.load %arg4[%c0_11, %c0_12] : memref<8x128xf32, #tpu.memory_space<vmem>>, vector<8x128xf32>
      tpu.vector_store %arg4[%c0_11, %c0_12], %17 {strides = array<i32>} : memref<8x128xf32, #tpu.memory_space<vmem>>, vector<8x128xf32>,
    } else {
    }
    return
  }
  func.func @transform_0(%arg0: i32, %arg1: i32) -> (i32, i32) {
    %c0_i32 = arith.constant 0 : i32
    %c0_i32_0 = arith.constant 0 : i32
    %c0_i32_1 = arith.constant 0 : i32
    return %c0_i32, %c0_i32_0 : i32, i32
  }
  func.func @transform_1(%arg0: i32, %arg1: i32) -> (i32, i32, i32) {
    %c0_i32 = arith.constant 0 : i32
    %c0_i32_0 = arith.constant 0 : i32
    return %arg1, %arg0, %c0_i32 : i32, i32, i32
  }
  func.func @transform_2(%arg0: i32, %arg1: i32) -> (i32, i32) {
    %c0_i32 = arith.constant 0 : i32
    %c0_i32_0 = arith.constant 0 : i32
    return %arg0, %c0_i32 : i32, i32
  }
}

</mosaic_0001>

<bundles_post_ra>
// kernel: tpu_custom_call.1
= control target key start
LH: loop header
LB: loop body
LE: loop exit
PB: predicated region body
PF: predicated region fallthrough
CT: control target
= control target key end

     0   :  { %7 = vsyncpa [#allocation3], 0  ;;  %s904_s0 = inlined_call_operand.hbm [shape: f32[128,128], index: 0, kind: input, shape index: {}]   ;;  %s905_s1 = inlined_call_operand.hbm [shape: f32[3,8,128], index: 1, kind: input, shape index: {}]   ;;  %s906_s2 = inlined_call_operand.hbm [shape: f32[8,128], index: 2, kind: output, shape index: {}]  }
   0x1   :  { %8 = vsyncpa [#allocation6], 0 }
   0x2   :  { %10 = vsyncpa [#allocation6 + $0x1], 0 }
   0x3   :  { %11 = vsyncpa [#allocation4], 0  ;;  %s716_s9 = smov 0   ;;  %s718_s10 = smov 0  }
   0x4   :  { %s720_s11 = smov 0   ;;  %s722_s12 = smov 0  }
   0x5   :  { %s724_s13 = smov 0   ;;  %s726_s14 = smov 0  }
   0x6 LB: > { %s377_s15 = sadd.s32 4294967295, %s690_s14   ;;  %p72_p0 = scmp.ne.s32.totalorder %s674_s10, %s670_s9  ;;  %s690_s14 = sphi %s726_s14, %s17_s14   ;;  %s686_s13 = sphi %s724_s13, %s924_s13   ;;  %s682_s12 = sphi %s722_s12, %s923_s12   ;;  %s678_s11 = sphi %s720_s11, %s922_s11   ;;  %s674_s10 = sphi %s718_s10, %s921_s10   ;;  %s670_s9 = sphi %s716_s9, %s920_s9  }
   0x7   : > { %p748_p1 = scmp.eq.s32.totalorder %s377_s15, 0  ;;  %p378_p2 = scmp.ge.s32.totalorder %s690_s14, 1 }
   0x8   : > { %p109_p3 = scmp.lt.s32.totalorder %s690_s14, 4  ;;  %s692_s19 = smov [#allocation2]  }
   0x9   : > { %s911_s16 = scalar_select %p748_p1, 1, 0 }
   0xa   : > { %p756_p4 = por %p748_p1, %p72_p0  ;;  %p760_p5 = pnand %p378_p2, %p109_p3 }
   0xb   : > { %s121_s20 = sshll.u32 %s692_s19, 4  ;;  %s26_s22 = sadd.s32 1, %s686_s13  ;;  %s122_s20 = int_to_ptr.vmem [resolvable:$true] %s121_s20 }
   0xc   : > { %s912_s17 = scalar_select %p756_p4, 1, 0 }
   0xd   : > { %s913_s18 = scalar_select %p760_p5, 1, 0 }
   0xe   : > { %p479_p6 = pneg %p760_p5  ;;  %s548_s25 = scalar_lea.hbm %s904_s0, 2048 }
   0xf   : > { %p549_p8 = scmp.ne.s32.totalorder %s904_s0, %s548_s25  ;;  %p555_p12 = scmp.lt.u32.totalorder %s548_s25, %s904_s0 }
  0x10   : > { %p768_p7 = pnand %p479_p6, %p748_p1 }
  0x12   : > { %p550_p9 = pneg %p768_p7 }
  0x14   : > { %p551_p10 = pnand %p550_p9, %p549_p8 }
  0x16   : > { %p552_p11 = pneg %p551_p10 }
  0x18   : > { %p557_p13 = pnand %p555_p12, %p552_p11 }
  0x1a   : > { %560 = shalt.err (!%p557_p13)
}
  0x1b   : > { %s561_s30 = scalar_lea.vmem %s122_s20, 2048  ;;  %p569_p6 = scmp.lt.s32.totalorder %s122_s20, %s122_s20 }
  0x1c   : > { %p562_p0 = scmp.ne.s32.totalorder %s122_s20, %s561_s30  ;;  %p570_p4 = scmp.lt.s32.totalorder %s561_s30, %s561_s30 }
  0x1e   : > { %p564_p2 = pnand %p562_p0, %p550_p9  ;;  %p571_p1 = por %p570_p4, %p569_p6 }
  0x20   : > { %p565_p3 = pneg %p564_p2 }
  0x22   : > { %p572_p5 = pnand %p571_p1, %p565_p3 }
  0x24   : > { %575 = shalt.err (!%p572_p5)
}
  0x25   : > { %s693_s3 = smov 128   ;;  %s694_s4 = smov 8  }
  0x26   : > { %482 = dma.hbm_to_vmem [thread:$0]  (!%p768_p7), %s904_s0, 2048, %s122_s20, [#allocation3], %s693_s3, %s693_s3, %s694_s4  }
  0x27   : > { %p27_p4 = scmp.ge.s32.totalorder %s26_s22, 3  ;;  %s59_s7 = sadd.s32 1, %s678_s11 }
  0x28   : > { %p66_p1 = scmp.ne.s32.totalorder %s678_s11, %s674_s10  ;;  %p67_p5 = scmp.eq.s32.totalorder %s690_s14, 0 }
  0x29   : > { %s926_s22 = smov (%p27_p4, %s26_s22), 0  ;;  %p488_p9 = scmp.lt.s32.totalorder %s690_s14, 3 }
  0x2a   : > { %p68_p8 = por %p67_p5, %p66_p1  ;;  %s54_s8 = ssub.s32 %s686_s13, %s926_s22 }
  0x2b   : > { %s135_s9 = sand.u32 1, %s678_s11   ;;  %p57_p10 = scmp.eq.s32.totalorder %s54_s8, 0 }
  0x2c   : > { %s381_s19 = sshll.u32 %s135_s9, 3  ;;  %s382_s23 = sshll.u32 %s686_s13, 7 }
  0x2d   : > { %s801_s24 = scalar_select %p57_p10, %s678_s11, %s59_s7  }
  0x2e   : > { %s806_s20 = scalar_lea.hbm %s905_s1, %s382_s23  ;;  %s139_s26 = scalar_lea.vmem [#allocation5], %s381_s19 }
  0x2f   : > { %s147_s27 = sshll.u32 %s139_s26, 4  ;;  %p808_p7 = pnand %p488_p9, %p68_p8  ;;  %s812_s27 = int_to_ptr.vmem [resolvable:$true] %s147_s27 }
  0x30   : > { %s136_s29 = scalar_lea.sflag [#allocation6], %s135_s9  ;;  %s576_s30 = scalar_lea.hbm %s806_s20, 128 }
  0x31   : > { %p577_p11 = scmp.ne.s32.totalorder %s806_s20, %s576_s30  ;;  %p578_p12 = pneg %p808_p7 }
  0x32   : > { %s581_s5 = scalar_lea.hbm %s905_s1, 384  ;;  %p582_p2 = scmp.lt.u32.totalorder %s806_s20, %s905_s1 }
  0x33   : > { %p579_p13 = pnand %p578_p12, %p577_p11  ;;  %p583_p3 = scmp.lt.u32.totalorder %s581_s5, %s576_s30 }
  0x34   : > { %p585_p4 = scmp.lt.u32.totalorder %s576_s30, %s806_s20 }
  0x35   : > { %p580_p0 = pneg %p579_p13  ;;  %p584_p6 = por %p583_p3, %p582_p2 }
  0x37   : > { %p586_p1 = por %p585_p4, %p584_p6 }
  0x39   : > { %p587_p5 = pnand %p586_p1, %p580_p0 }
  0x3b   : > { %590 = shalt.err (!%p587_p5)
}
  0x3c   : > { %s591_s8 = scalar_lea.vmem %s812_s27, 128  ;;  %s695_s9 = smov [#allocation5]  }
  0x3d   : > { %p592_p8 = scmp.ne.s32.totalorder %s812_s27, %s591_s8  ;;  %s596_s19 = sshll.u32 %s695_s9, 4  ;;  %s597_s19 = int_to_ptr.vmem [resolvable:$false] %s596_s19 }
  0x3e   : > { %s598_s23 = scalar_lea.vmem %s597_s19, 256  ;;  %p599_p11 = scmp.lt.s32.totalorder %s812_s27, %s597_s19 }
  0x3f   : > { %p594_p9 = pnand %p592_p8, %p578_p12  ;;  %p600_p13 = scmp.lt.s32.totalorder %s598_s23, %s591_s8 }
  0x41   : > { %p595_p10 = pneg %p594_p9  ;;  %p601_p2 = por %p600_p13, %p599_p11 }
  0x43   : > { %p602_p3 = pnand %p601_p2, %p595_p10 }
  0x45   : > { %605 = shalt.err (!%p602_p3)
}
  0x46   : > { %486 = dma.hbm_to_vmem [thread:$0]  (!%p808_p7), %s806_s20, 128, %s812_s27, %s136_s29  }
  0x47   : > { %p916_p0 = scmp.ne.s32.totalorder %s913_s18, 0 }
  0x48   : > { %p917_p12 = scmp.ne.s32.totalorder (!%p916_p0), %s911_s16, 0 }
  0x49   : > { %156 = sbr.rel (%p916_p0) target bundleno = 493 (0x1ed), region = 28 }
  0x50   : > { %657 = dma.done.wait (%p917_p12), [#allocation3], 2048  }
  0x51   : > { %659 = vsyncadd (%p917_p12), [#allocation3], 4294965248  ;;  %s162_s21 = sand.u32 1, %s674_s10   ;;  %p918_p6 = scmp.ne.s32.totalorder %s912_s17, 0 }
  0x52   : > { %s846_s25 = sshll.u32 %s162_s21, 3  ;;  %s163_s26 = scalar_lea.sflag [#allocation6], %s162_s21 }
  0x53   : > { %s166_s28 = scalar_lea.vmem [#allocation5], %s846_s25 }
  0x54   : > { %661 = dma.done.wait (%p918_p6), %s163_s26, 128  }
  0x55   : > { %663 = vsyncadd (%p918_p6), %s163_s26, 4294967168  ;;  %v696_v0 = vmov 0.0|0.0   ;;  %vm697_vm0 = vmmov 0   ;;  %v698_v1 = vmov 0.0   ;;  %v183_v2 = vld [vmem:[#allocation2] sm:$0xff]  ;;  %v184_v3 = vld [vmem:[#allocation2 + $0x8] sm:$0xff] }
  0x56   : > { %445 = vmatprep.subr.bf16.mxu0 %v696_v0  ;;  %442 = vmatprep.mubr.msk.f32.mxu0 %vm697_vm0, %v698_v1  ;;  %v185_v4 = vld [vmem:[#allocation2 + $0x10] sm:$0xff]  ;;  %v446_v5 = vpack.c.bf16 %v184_v3, %v183_v2  ;;  %v186_v6 = vld [vmem:[#allocation2 + $0x18] sm:$0xff]  ;;  %v187_v8 = vld [vmem:[#allocation2 + $0x20] sm:$0xff]  ;;  %p386_p7 = scmp.ne.s32.totalorder %s682_s12, 0 }
  0x57   : > { %v449_v7 = vpack.c.bf16 %v186_v6, %v185_v4  ;;  %v188_v9 = vld [vmem:[#allocation2 + $0x28] sm:$0xff]  ;;  %v189_v11 = vld [vmem:[#allocation2 + $0x30] sm:$0xff]  ;;  %v190_v12 = vld [vmem:[#allocation2 + $0x38] sm:$0xff] }
  0x58   : > { %447 = vmatpush3.bf16.msra.mxu0 %v446_v5  ;;  %v452_v10 = vpack.c.bf16 %v188_v9, %v187_v8  ;;  %v455_v13 = vpack.c.bf16 %v190_v12, %v189_v11  ;;  %v191_v14 = vld [vmem:[#allocation2 + $0x40] sm:$0xff]  ;;  %v192_v15 = vld [vmem:[#allocation2 + $0x48] sm:$0xff]  ;;  %v193_v17 = vld [vmem:[#allocation2 + $0x50] sm:$0xff] }
  0x59   : > { %448 = vmatprep.subr.bf16.mxu0 %v696_v0  ;;  %v458_v16 = vpack.c.bf16 %v192_v15, %v191_v14  ;;  %v194_v18 = vld [vmem:[#allocation2 + $0x58] sm:$0xff]  ;;  %v195_v20 = vld [vmem:[#allocation2 + $0x60] sm:$0xff]  ;;  %v196_v21 = vld [vmem:[#allocation2 + $0x68] sm:$0xff] }
  0x5a   : > { %v461_v19 = vpack.c.bf16 %v194_v18, %v193_v17  ;;  %v464_v22 = vpack.c.bf16 %v196_v21, %v195_v20  ;;  %v197_v23 = vld [vmem:[#allocation2 + $0x70] sm:$0xff]  ;;  %v198_v24 = vld [vmem:[#allocation2 + $0x78] sm:$0xff]  ;;  %v182_v26 = vld [vmem:[%s166_s28] sm:$0xff] }
  0x5b   : > { %v467_v25 = vpack.c.bf16 %v198_v24, %v197_v23 }
  0x5c   : > { %450 = vmatpush3.bf16.msra.mxu0 %v449_v7 }
  0x5d   : > { %451 = vmatprep.subr.bf16.mxu0 %v696_v0 }
  0x60   : > { %453 = vmatpush3.bf16.msra.mxu0 %v452_v10 }
  0x61   : > { %454 = vmatprep.subr.bf16.mxu0 %v696_v0 }
  0x64   : > { %456 = vmatpush3.bf16.msra.mxu0 %v455_v13 }
  0x65   : > { %457 = vmatprep.subr.bf16.mxu0 %v696_v0 }
  0x68   : > { %459 = vmatpush3.bf16.msra.mxu0 %v458_v16 }
  0x69   : > { %460 = vmatprep.subr.bf16.mxu0 %v696_v0 }
  0x6c   : > { %462 = vmatpush3.bf16.msra.mxu0 %v461_v19 }
  0x6d   : > { %463 = vmatprep.subr.bf16.mxu0 %v696_v0 }
  0x70   : > { %465 = vmatpush3.bf16.msra.mxu0 %v464_v22 }
  0x71   : > { %466 = vmatprep.subr.bf16.mxu0 %v696_v0 }
  0x74   : > { %468 = vmatpush3.bf16.msra.mxu0 %v467_v25 }
  0x77   : > { %443 = vmatmul.mubr.f32.vlgmr.msra.gmra.mrb[0].mxu0 %v182_v26 }
 0x145   : > { %272 = sbr.rel (%p386_p7) target bundleno = 332 (0x14c), region = 40 }
 0x14a   : > { %v265_v27 = vpop.f32.mrb[0].mxu0 }
 0x14b   : > { %v444_v28 = vpop.f32.mrb[1].mxu0  ;;  %273 = vst [vmem:[#allocation7] sm:$0xff] (!%p386_p7), %v265_v27 }
 0x14c PF: > { %p387_p4 = scmp.le.s32.totalorder %s682_s12, 0 }
 0x14e   : > { %277 = sbr.rel (%p387_p4) target bundleno = 342 (0x156), region = 44 }
 0x152   : > { %v278_v29 = vld [vmem:[#allocation7] sm:$0xff] (!%p387_p4) }
 0x153   : > { %v279_v30 = vmul.f32 (!%p387_p4), %v278_v29, %v265_v27 }
 0x155   : > { %280 = vst [vmem:[#allocation7] sm:$0xff] %v279_v30 }
 0x156 PF: > { %p388_p1 = scmp.ne.s32.totalorder %s682_s12, 2 }
 0x157   : > { %s699_s16 = smov (!%p388_p1), 127   ;;  %vm290_vm1 = vcmask (!%p388_p1), 1039360  }
 0x158   : > { %284 = sbr.rel (%p388_p1) target bundleno = 468 (0x1d4), region = 48 }
 0x15c   : > { %v285_v31 = vld [vmem:[#allocation7] sm:$0xff] (!%p388_p1) }
 0x15d   : > { %287 = vrot.lane.b32.xlu0 (!%p388_p1), %v285_v31, %s699_s16 }
 0x1cf   : > { %v288_v32 = vpop.permute.xlu0 %287 }
 0x1d0   : > { %v291_v33 = vsel %vm290_vm1, %v288_v32, 0.0 }
 0x1d1   : > { %v292_v34 = vsub.f32 %v285_v31, %v291_v33 }
 0x1d3   : > { %293 = vst [vmem:[#allocation7] sm:$0xff] %v292_v34 }
 0x1d4 PF: > { %p860_p5 = scmp.eq.s32.totalorder %s377_s15, 2  ;;  %s700_s18 = smov [#allocation7]  }
 0x1d5   : > { %s303_s20 = sshll.u32 %s700_s18, 4  ;;  %s304_s20 = int_to_ptr.vmem [resolvable:$true] %s303_s20 }
 0x1d6   : > { %s606_s12 = scalar_lea.vmem %s304_s20, 128  ;;  %p613_p11 = scmp.lt.s32.totalorder %s304_s20, %s304_s20 }
 0x1d7   : > { %p607_p8 = scmp.ne.s32.totalorder %s304_s20, %s606_s12  ;;  %p614_p13 = scmp.lt.s32.totalorder %s606_s12, %s606_s12 }
 0x1d9   : > { %p608_p9 = pnand %p607_p8, %p860_p5  ;;  %p615_p2 = por %p614_p13, %p613_p11 }
 0x1db   : > { %p609_p10 = pneg %p608_p9 }
 0x1dd   : > { %p616_p3 = pnand %p615_p2, %p609_p10 }
 0x1df   : > { %619 = shalt.err (!%p616_p3)
}
 0x1e0   : > { %s620_s15 = scalar_lea.hbm %s906_s2, 128 }
 0x1e1   : > { %p621_p0 = scmp.ne.s32.totalorder %s906_s2, %s620_s15  ;;  %p626_p7 = scmp.lt.u32.totalorder %s620_s15, %s906_s2 }
 0x1e3   : > { %p622_p12 = pnand %p621_p0, %p860_p5 }
 0x1e5   : > { %p623_p6 = pneg %p622_p12 }
 0x1e7   : > { %p628_p4 = pnand %p626_p7, %p623_p6 }
 0x1e9   : > { %631 = shalt.err (!%p628_p4)
}
 0x1ea   : > { %476 = dma.vmem_to_hbm [thread:$0]  (%p860_p5), %s304_s20, 128, %s906_s2, [#allocation4]  }
 0x1eb   : > { %665 = dma.done.wait (%p860_p5), [#allocation4], 128  }
 0x1ec   : > { %667 = vsyncadd (%p860_p5), [#allocation4], 4294967168 }
 0x1ed PF: > { %s17_s14 = sadd.s32 1, %s690_s14   ;;  %s920_s9 = smov %s674_s10 }
 0x1ee   : > { %p14_p1 = scmp.ge.s32.totalorder %s17_s14, 5   ;;  %s921_s10 = smov %s678_s11 }
 0x1ef   : > { %s922_s11 = smov %s801_s24  ;;  %s923_s12 = smov %s686_s13 }
 0x1f0   : > { %s924_s13 = smov %s926_s22  ;;  %16 = sbr.rel (!%p14_p1) target bundleno = 6 (0x6), region = 83 }
 0x1f7   :  { %316 = vsyncpa [#allocation3], 1 }
 0x1f8   :  { %318 = vsyncpa [#allocation3 + $0x1], 1 }
 0x1f9   :  { %319 = vsyncpa [#allocation6], 1 }
 0x1fa   :  { %321 = vsyncpa [#allocation6 + $0x1], 1 }
 0x1fb   :  { %322 = vsyncpa [#allocation4], 1 }
 0x1fc   :  { %324 = vsyncpa [#allocation4 + $0x1], 1 }

</bundles_post_ra>
